<compile_context>
chip_gen: v7x
topology: tpu7x:2x2x1
jax: 0.10.0
libtpu: 0.0.40
codegen_flags: <defaults>
</compile_context>

<pallas_src>
import functools

import jax
import jax.numpy as jnp
from jax import lax
from jax.experimental import pallas as pl
from jax.experimental.pallas import tpu as pltpu


_IN, _HID, _OUT = 3, 6, 3


def _mlp_kernel(x_ref, w1_ref, b1_ref, w2_ref, b2_ref, o_ref, *, chunk_rows):
    # x_ref : (3, SB, 128) f32 VMEM  -- batch dense on sublanes (SB) and lanes (128)
    # w1_ref: (6, 3) f32 SMEM        (torch layout [out_features, in_features])
    # b1_ref: (6,)   f32 SMEM
    # w2_ref: (3, 6) f32 SMEM
    # b2_ref: (3,)   f32 SMEM
    # o_ref : (3, SB, 128) f32 VMEM
    sb = x_ref.shape[1]
    ch = chunk_rows if (sb >= chunk_rows and sb % chunk_rows == 0) else sb
    n_chunks = sb // ch

    # Hoist the 36 weight/bias scalar reads (and their splats) out of the chunk loop.
    w1 = [[w1_ref[j, k] for k in range(_IN)] for j in range(_HID)]
    b1 = [b1_ref[j] for j in range(_HID)]
    w2 = [[w2_ref[j, k] for k in range(_HID)] for j in range(_OUT)]
    b2 = [b2_ref[j] for j in range(_OUT)]

    def chunk_body(c, carry):
        base = c * ch
        if not isinstance(base, int):
            base = pl.multiple_of(base, ch)
        xs = [x_ref[k, pl.ds(base, ch), :] for k in range(_IN)]  # 3 x (ch, 128)

        # fc1 + ReLU (VPU, unrolled): h_j = relu(b1[j] + sum_k w1[j,k] * x_k)
        hs = []
        for j in range(_HID):
            acc = w1[j][0] * xs[0]
            for k in range(1, _IN):
                acc = acc + w1[j][k] * xs[k]
            hs.append(jnp.maximum(acc + b1[j], 0.0))

        # fc2: y_j = b2[j] + sum_k w2[j,k] * h_k ; dense (ch, 128) stores.
        for j in range(_OUT):
            acc = w2[j][0] * hs[0]
            for k in range(1, _HID):
                acc = acc + w2[j][k] * hs[k]
            o_ref[j, pl.ds(base, ch), :] = acc + b2[j]
        return carry

    if n_chunks == 1:
        chunk_body(0, 0)
    else:
        lax.fori_loop(0, n_chunks, chunk_body, 0, unroll=4)


def _round_up(n, m):
    return ((n + m - 1) // m) * m


def simple_nn_forward(x, w1, b1, w2, b2, *, block_rows=1024, chunk_rows=8):
    """Fused SimpleNN forward. x: (B, 3) f32. Torch-layout params:
    w1: (6, 3), b1: (6,), w2: (3, 6), b2: (3,)."""
    B = x.shape[0]
    f32 = jnp.float32

    # Make the knobs legal block extents (sublane multiple of 8).
    chunk_rows = max(8, _round_up(chunk_rows, 8))
    block_rows = max(chunk_rows, _round_up(block_rows, chunk_rows))

    # Feature-major, batch dense on sublanes *and* lanes:
    # (B, 3) -> (3, B) -> pad lanes to 128 -> free reshape to (3, R, 128).
    # TODO(synk): if the surrounding model keeps activations feature-major (3, B),
    # the transpose / lane-pad passes here disappear entirely.
    xT = x.astype(f32).T
    B_pad = _round_up(B, 128)
    if B_pad != B:
        xT = jnp.pad(xT, ((0, 0), (0, B_pad - B)))
    R = B_pad // 128
    x3 = xT.reshape(_IN, R, 128)

    # Sublane block size: whole extent for small inputs; otherwise a multiple of
    # chunk_rows capped at block_rows (1.5 MiB in + 1.5 MiB out per step at 1024)
    # and at ceil(R/2) so large inputs always get >= 2 grid steps (v7x megacore).
    if R <= 2 * chunk_rows:
        SB = R
    else:
        SB = min(block_rows, _round_up((R + 1) // 2, chunk_rows))
    grid = ((R + SB - 1) // SB,)

    smem = pl.BlockSpec(memory_space=pltpu.MemorySpace.SMEM)  # whole array, resident

    out3 = pl.pallas_call(
        functools.partial(_mlp_kernel, chunk_rows=chunk_rows),
        out_shape=jax.ShapeDtypeStruct((_OUT, R, 128), f32),
        grid=grid,
        in_specs=[
            pl.BlockSpec((_IN, SB, 128), lambda i: (0, i, 0)),  # x block (VMEM, pipelined)
            smem,  # w1
            smem,  # b1
            smem,  # w2
            smem,  # b2
        ],
        out_specs=pl.BlockSpec((_OUT, SB, 128), lambda i: (0, i, 0)),
        compiler_params=pltpu.CompilerParams(
            dimension_semantics=("parallel",),  # shard batch blocks across v7x's 2 TCs
        ),
    )(x3, w1.astype(f32), b1.astype(f32), w2.astype(f32), b2.astype(f32))

    # (3, R, 128) -> (3, B_pad) is a free reshape; slice off lane padding, back to (B, 3).
    return out3.reshape(_OUT, B_pad)[:, :B].T


def _torch_style_linear_init(key, out_features, in_features):
    """Deterministic init mimicking nn.Linear defaults: U(-k, k), k = 1/sqrt(in)."""
    k = 1.0 / jnp.sqrt(jnp.float32(in_features))
    kw, kb = jax.random.split(key)
    w = jax.random.uniform(kw, (out_features, in_features), jnp.float32, -k, k)
    b = jax.random.uniform(kb, (out_features,), jnp.float32, -k, k)
    return w, b


def _reference(x, w1, b1, w2, b2):
    return jnp.maximum(x @ w1.T + b1, 0.0) @ w2.T + b2


if __name__ == "__main__":
    root = jax.random.PRNGKey(0)
    k_small, k_mid, k_big, k_fc1, k_fc2 = jax.random.split(root, 5)

    w1, b1 = _torch_style_linear_init(k_fc1, 6, 3)  # fc1: Linear(3, 6)
    w2, b2 = _torch_style_linear_init(k_fc2, 3, 6)  # fc2: Linear(6, 3)

    # Small batch (module's natural usage; single full-extent block, R=1).
    x = jax.random.normal(k_small, (8, 3), dtype=jnp.float32)
    out = simple_nn_forward(x, w1, b1, w2, b2)
    jax.block_until_ready(out)
    assert out.shape == (8, 3)
    assert jnp.allclose(out, _reference(x, w1, b1, w2, b2), atol=1e-5, rtol=1e-5)

    # Mid batch: non-multiple-of-128 lanes, full-extent block with R not a multiple of 8.
    x_mid = jax.random.normal(k_mid, (300, 3), dtype=jnp.float32)
    out_mid = simple_nn_forward(x_mid, w1, b1, w2, b2)
    jax.block_until_ready(out_mid)
    assert out_mid.shape == (300, 3)
    assert jnp.allclose(out_mid, _reference(x_mid, w1, b1, w2, b2), atol=1e-5, rtol=1e-5)

    # Larger batch: multi-step parallel grid, chunked+unrolled inner loop, and a
    # masked (non-dividing) last sublane block.
    x_big = jax.random.normal(k_big, (20000, 3), dtype=jnp.float32)
    out_big = simple_nn_forward(x_big, w1, b1, w2, b2)
    jax.block_until_ready(out_big)
    assert out_big.shape == (20000, 3)
    assert jnp.allclose(out_big, _reference(x_big, w1, b1, w2, b2), atol=1e-5, rtol=1e-5)

    print("KERNEL_OK")
</pallas_src>

<mosaic_0001>
module attributes {stable_mosaic.version = 11 : i64} {
  func.func @_mlp_kernel(%arg0: i32, %arg1: memref<3x1x128xf32, #tpu.memory_space<vmem>>, %arg2: memref<6x3xf32, #tpu.memory_space<smem>>, %arg3: memref<6xf32, #tpu.memory_space<smem>>, %arg4: memref<3x6xf32, #tpu.memory_space<smem>>, %arg5: memref<3xf32, #tpu.memory_space<smem>>, %arg6: memref<3x1x128xf32, #tpu.memory_space<vmem>>) attributes {dimension_semantics = [#tpu.dimension_semantics<parallel>], iteration_bounds = array<i64: 1>, scalar_prefetch = 0 : i64, scratch_operands = 0 : i64, tpu.core_type = #tpu.core_type<tc>, window_params = [{transform_indices = @transform_0, window_bounds = array<i64: 3, 1, 128>}, {transform_indices = @transform_1, window_bounds = array<i64: 6, 3>}, {transform_indices = @transform_2, window_bounds = array<i64: 6>}, {transform_indices = @transform_3, window_bounds = array<i64: 3, 6>}, {transform_indices = @transform_4, window_bounds = array<i64: 3>}, {transform_indices = @transform_5, window_bounds = array<i64: 3, 1, 128>}]} {
    %c0 = arith.constant 0 : index
    %c0_0 = arith.constant 0 : index
    %0 = memref.load %arg2[%c0, %c0_0] : memref<6x3xf32, #tpu.memory_space<smem>>
    %c0_1 = arith.constant 0 : index
    %c1 = arith.constant 1 : index
    %1 = memref.load %arg2[%c0_1, %c1] : memref<6x3xf32, #tpu.memory_space<smem>>
    %c0_2 = arith.constant 0 : index
    %c2 = arith.constant 2 : index
    %2 = memref.load %arg2[%c0_2, %c2] : memref<6x3xf32, #tpu.memory_space<smem>>
    %c1_3 = arith.constant 1 : index
    %c0_4 = arith.constant 0 : index
    %3 = memref.load %arg2[%c1_3, %c0_4] : memref<6x3xf32, #tpu.memory_space<smem>>
    %c1_5 = arith.constant 1 : index
    %c1_6 = arith.constant 1 : index
    %4 = memref.load %arg2[%c1_5, %c1_6] : memref<6x3xf32, #tpu.memory_space<smem>>
    %c1_7 = arith.constant 1 : index
    %c2_8 = arith.constant 2 : index
    %5 = memref.load %arg2[%c1_7, %c2_8] : memref<6x3xf32, #tpu.memory_space<smem>>
    %c2_9 = arith.constant 2 : index
    %c0_10 = arith.constant 0 : index
    %6 = memref.load %arg2[%c2_9, %c0_10] : memref<6x3xf32, #tpu.memory_space<smem>>
    %c2_11 = arith.constant 2 : index
    %c1_12 = arith.constant 1 : index
    %7 = memref.load %arg2[%c2_11, %c1_12] : memref<6x3xf32, #tpu.memory_space<smem>>
    %c2_13 = arith.constant 2 : index
    %c2_14 = arith.constant 2 : index
    %8 = memref.load %arg2[%c2_13, %c2_14] : memref<6x3xf32, #tpu.memory_space<smem>>
    %c3 = arith.constant 3 : index
    %c0_15 = arith.constant 0 : index
    %9 = memref.load %arg2[%c3, %c0_15] : memref<6x3xf32, #tpu.memory_space<smem>>
    %c3_16 = arith.constant 3 : index
    %c1_17 = arith.constant 1 : index
    %10 = memref.load %arg2[%c3_16, %c1_17] : memref<6x3xf32, #tpu.memory_space<smem>>
    %c3_18 = arith.constant 3 : index
    %c2_19 = arith.constant 2 : index
    %11 = memref.load %arg2[%c3_18, %c2_19] : memref<6x3xf32, #tpu.memory_space<smem>>
    %c4 = arith.constant 4 : index
    %c0_20 = arith.constant 0 : index
    %12 = memref.load %arg2[%c4, %c0_20] : memref<6x3xf32, #tpu.memory_space<smem>>
    %c4_21 = arith.constant 4 : index
    %c1_22 = arith.constant 1 : index
    %13 = memref.load %arg2[%c4_21, %c1_22] : memref<6x3xf32, #tpu.memory_space<smem>>
    %c4_23 = arith.constant 4 : index
    %c2_24 = arith.constant 2 : index
    %14 = memref.load %arg2[%c4_23, %c2_24] : memref<6x3xf32, #tpu.memory_space<smem>>
    %c5 = arith.constant 5 : index
    %c0_25 = arith.constant 0 : index
    %15 = memref.load %arg2[%c5, %c0_25] : memref<6x3xf32, #tpu.memory_space<smem>>
    %c5_26 = arith.constant 5 : index
    %c1_27 = arith.constant 1 : index
    %16 = memref.load %arg2[%c5_26, %c1_27] : memref<6x3xf32, #tpu.memory_space<smem>>
    %c5_28 = arith.constant 5 : index
    %c2_29 = arith.constant 2 : index
    %17 = memref.load %arg2[%c5_28, %c2_29] : memref<6x3xf32, #tpu.memory_space<smem>>
    %c0_30 = arith.constant 0 : index
    %18 = memref.load %arg3[%c0_30] : memref<6xf32, #tpu.memory_space<smem>>
    %c1_31 = arith.constant 1 : index
    %19 = memref.load %arg3[%c1_31] : memref<6xf32, #tpu.memory_space<smem>>
    %c2_32 = arith.constant 2 : index
    %20 = memref.load %arg3[%c2_32] : memref<6xf32, #tpu.memory_space<smem>>
    %c3_33 = arith.constant 3 : index
    %21 = memref.load %arg3[%c3_33] : memref<6xf32, #tpu.memory_space<smem>>
    %c4_34 = arith.constant 4 : index
    %22 = memref.load %arg3[%c4_34] : memref<6xf32, #tpu.memory_space<smem>>
    %c5_35 = arith.constant 5 : index
    %23 = memref.load %arg3[%c5_35] : memref<6xf32, #tpu.memory_space<smem>>
    %c0_36 = arith.constant 0 : index
    %c0_37 = arith.constant 0 : index
    %24 = memref.load %arg4[%c0_36, %c0_37] : memref<3x6xf32, #tpu.memory_space<smem>>
    %c0_38 = arith.constant 0 : index
    %c1_39 = arith.constant 1 : index
    %25 = memref.load %arg4[%c0_38, %c1_39] : memref<3x6xf32, #tpu.memory_space<smem>>
    %c0_40 = arith.constant 0 : index
    %c2_41 = arith.constant 2 : index
    %26 = memref.load %arg4[%c0_40, %c2_41] : memref<3x6xf32, #tpu.memory_space<smem>>
    %c0_42 = arith.constant 0 : index
    %c3_43 = arith.constant 3 : index
    %27 = memref.load %arg4[%c0_42, %c3_43] : memref<3x6xf32, #tpu.memory_space<smem>>
    %c0_44 = arith.constant 0 : index
    %c4_45 = arith.constant 4 : index
    %28 = memref.load %arg4[%c0_44, %c4_45] : memref<3x6xf32, #tpu.memory_space<smem>>
    %c0_46 = arith.constant 0 : index
    %c5_47 = arith.constant 5 : index
    %29 = memref.load %arg4[%c0_46, %c5_47] : memref<3x6xf32, #tpu.memory_space<smem>>
    %c1_48 = arith.constant 1 : index
    %c0_49 = arith.constant 0 : index
    %30 = memref.load %arg4[%c1_48, %c0_49] : memref<3x6xf32, #tpu.memory_space<smem>>
    %c1_50 = arith.constant 1 : index
    %c1_51 = arith.constant 1 : index
    %31 = memref.load %arg4[%c1_50, %c1_51] : memref<3x6xf32, #tpu.memory_space<smem>>
    %c1_52 = arith.constant 1 : index
    %c2_53 = arith.constant 2 : index
    %32 = memref.load %arg4[%c1_52, %c2_53] : memref<3x6xf32, #tpu.memory_space<smem>>
    %c1_54 = arith.constant 1 : index
    %c3_55 = arith.constant 3 : index
    %33 = memref.load %arg4[%c1_54, %c3_55] : memref<3x6xf32, #tpu.memory_space<smem>>
    %c1_56 = arith.constant 1 : index
    %c4_57 = arith.constant 4 : index
    %34 = memref.load %arg4[%c1_56, %c4_57] : memref<3x6xf32, #tpu.memory_space<smem>>
    %c1_58 = arith.constant 1 : index
    %c5_59 = arith.constant 5 : index
    %35 = memref.load %arg4[%c1_58, %c5_59] : memref<3x6xf32, #tpu.memory_space<smem>>
    %c2_60 = arith.constant 2 : index
    %c0_61 = arith.constant 0 : index
    %36 = memref.load %arg4[%c2_60, %c0_61] : memref<3x6xf32, #tpu.memory_space<smem>>
    %c2_62 = arith.constant 2 : index
    %c1_63 = arith.constant 1 : index
    %37 = memref.load %arg4[%c2_62, %c1_63] : memref<3x6xf32, #tpu.memory_space<smem>>
    %c2_64 = arith.constant 2 : index
    %c2_65 = arith.constant 2 : index
    %38 = memref.load %arg4[%c2_64, %c2_65] : memref<3x6xf32, #tpu.memory_space<smem>>
    %c2_66 = arith.constant 2 : index
    %c3_67 = arith.constant 3 : index
    %39 = memref.load %arg4[%c2_66, %c3_67] : memref<3x6xf32, #tpu.memory_space<smem>>
    %c2_68 = arith.constant 2 : index
    %c4_69 = arith.constant 4 : index
    %40 = memref.load %arg4[%c2_68, %c4_69] : memref<3x6xf32, #tpu.memory_space<smem>>
    %c2_70 = arith.constant 2 : index
    %c5_71 = arith.constant 5 : index
    %41 = memref.load %arg4[%c2_70, %c5_71] : memref<3x6xf32, #tpu.memory_space<smem>>
    %c0_72 = arith.constant 0 : index
    %42 = memref.load %arg5[%c0_72] : memref<3xf32, #tpu.memory_space<smem>>
    %c1_73 = arith.constant 1 : index
    %43 = memref.load %arg5[%c1_73] : memref<3xf32, #tpu.memory_space<smem>>
    %c2_74 = arith.constant 2 : index
    %44 = memref.load %arg5[%c2_74] : memref<3xf32, #tpu.memory_space<smem>>
    %c0_75 = arith.constant 0 : index
    %c0_76 = arith.constant 0 : index
    %c0_77 = arith.constant 0 : index
    %45 = vector.load %arg1[%c0_75, %c0_76, %c0_77] : memref<3x1x128xf32, #tpu.memory_space<vmem>>, vector<1x1x128xf32>
    %46 = vector.shape_cast %45 : vector<1x1x128xf32> to vector<1x128xf32>
    %c1_78 = arith.constant 1 : index
    %c0_79 = arith.constant 0 : index
    %c0_80 = arith.constant 0 : index
    %47 = vector.load %arg1[%c1_78, %c0_79, %c0_80] : memref<3x1x128xf32, #tpu.memory_space<vmem>>, vector<1x1x128xf32>
    %48 = vector.shape_cast %47 : vector<1x1x128xf32> to vector<1x128xf32>
    %c2_81 = arith.constant 2 : index
    %c0_82 = arith.constant 0 : index
    %c0_83 = arith.constant 0 : index
    %49 = vector.load %arg1[%c2_81, %c0_82, %c0_83] : memref<3x1x128xf32, #tpu.memory_space<vmem>>, vector<1x1x128xf32>
    %50 = vector.shape_cast %49 : vector<1x1x128xf32> to vector<1x128xf32>
    %51 = vector.broadcast %0 : f32 to vector<1x128xf32>
    %52 = arith.mulf %51, %46 : vector<1x128xf32>
    %53 = vector.broadcast %1 : f32 to vector<1x128xf32>
    %54 = arith.mulf %53, %48 : vector<1x128xf32>
    %55 = arith.addf %52, %54 : vector<1x128xf32>
    %56 = vector.broadcast %2 : f32 to vector<1x128xf32>
    %57 = arith.mulf %56, %50 : vector<1x128xf32>
    %58 = arith.addf %55, %57 : vector<1x128xf32>
    %59 = vector.broadcast %18 : f32 to vector<1x128xf32>
    %60 = arith.addf %58, %59 : vector<1x128xf32>
    %cst = arith.constant 0.000000e+00 : f32
    %61 = vector.broadcast %cst : f32 to vector<1x128xf32>
    %62 = arith.maximumf %60, %61 : vector<1x128xf32>
    %63 = vector.broadcast %3 : f32 to vector<1x128xf32>
    %64 = arith.mulf %63, %46 : vector<1x128xf32>
    %65 = vector.broadcast %4 : f32 to vector<1x128xf32>
    %66 = arith.mulf %65, %48 : vector<1x128xf32>
    %67 = arith.addf %64, %66 : vector<1x128xf32>
    %68 = vector.broadcast %5 : f32 to vector<1x128xf32>
    %69 = arith.mulf %68, %50 : vector<1x128xf32>
    %70 = arith.addf %67, %69 : vector<1x128xf32>
    %71 = vector.broadcast %19 : f32 to vector<1x128xf32>
    %72 = arith.addf %70, %71 : vector<1x128xf32>
    %cst_84 = arith.constant 0.000000e+00 : f32
    %73 = vector.broadcast %cst_84 : f32 to vector<1x128xf32>
    %74 = arith.maximumf %72, %73 : vector<1x128xf32>
    %75 = vector.broadcast %6 : f32 to vector<1x128xf32>
    %76 = arith.mulf %75, %46 : vector<1x128xf32>
    %77 = vector.broadcast %7 : f32 to vector<1x128xf32>
    %78 = arith.mulf %77, %48 : vector<1x128xf32>
    %79 = arith.addf %76, %78 : vector<1x128xf32>
    %80 = vector.broadcast %8 : f32 to vector<1x128xf32>
    %81 = arith.mulf %80, %50 : vector<1x128xf32>
    %82 = arith.addf %79, %81 : vector<1x128xf32>
    %83 = vector.broadcast %20 : f32 to vector<1x128xf32>
    %84 = arith.addf %82, %83 : vector<1x128xf32>
    %cst_85 = arith.constant 0.000000e+00 : f32
    %85 = vector.broadcast %cst_85 : f32 to vector<1x128xf32>
    %86 = arith.maximumf %84, %85 : vector<1x128xf32>
    %87 = vector.broadcast %9 : f32 to vector<1x128xf32>
    %88 = arith.mulf %87, %46 : vector<1x128xf32>
    %89 = vector.broadcast %10 : f32 to vector<1x128xf32>
    %90 = arith.mulf %89, %48 : vector<1x128xf32>
    %91 = arith.addf %88, %90 : vector<1x128xf32>
    %92 = vector.broadcast %11 : f32 to vector<1x128xf32>
    %93 = arith.mulf %92, %50 : vector<1x128xf32>
    %94 = arith.addf %91, %93 : vector<1x128xf32>
    %95 = vector.broadcast %21 : f32 to vector<1x128xf32>
    %96 = arith.addf %94, %95 : vector<1x128xf32>
    %cst_86 = arith.constant 0.000000e+00 : f32
    %97 = vector.broadcast %cst_86 : f32 to vector<1x128xf32>
    %98 = arith.maximumf %96, %97 : vector<1x128xf32>
    %99 = vector.broadcast %12 : f32 to vector<1x128xf32>
    %100 = arith.mulf %99, %46 : vector<1x128xf32>
    %101 = vector.broadcast %13 : f32 to vector<1x128xf32>
    %102 = arith.mulf %101, %48 : vector<1x128xf32>
    %103 = arith.addf %100, %102 : vector<1x128xf32>
    %104 = vector.broadcast %14 : f32 to vector<1x128xf32>
    %105 = arith.mulf %104, %50 : vector<1x128xf32>
    %106 = arith.addf %103, %105 : vector<1x128xf32>
    %107 = vector.broadcast %22 : f32 to vector<1x128xf32>
    %108 = arith.addf %106, %107 : vector<1x128xf32>
    %cst_87 = arith.constant 0.000000e+00 : f32
    %109 = vector.broadcast %cst_87 : f32 to vector<1x128xf32>
    %110 = arith.maximumf %108, %109 : vector<1x128xf32>
    %111 = vector.broadcast %15 : f32 to vector<1x128xf32>
    %112 = arith.mulf %111, %46 : vector<1x128xf32>
    %113 = vector.broadcast %16 : f32 to vector<1x128xf32>
    %114 = arith.mulf %113, %48 : vector<1x128xf32>
    %115 = arith.addf %112, %114 : vector<1x128xf32>
    %116 = vector.broadcast %17 : f32 to vector<1x128xf32>
    %117 = arith.mulf %116, %50 : vector<1x128xf32>
    %118 = arith.addf %115, %117 : vector<1x128xf32>
    %119 = vector.broadcast %23 : f32 to vector<1x128xf32>
    %120 = arith.addf %118, %119 : vector<1x128xf32>
    %cst_88 = arith.constant 0.000000e+00 : f32
    %121 = vector.broadcast %cst_88 : f32 to vector<1x128xf32>
    %122 = arith.maximumf %120, %121 : vector<1x128xf32>
    %123 = vector.broadcast %24 : f32 to vector<1x128xf32>
    %124 = arith.mulf %123, %62 : vector<1x128xf32>
    %125 = vector.broadcast %25 : f32 to vector<1x128xf32>
    %126 = arith.mulf %125, %74 : vector<1x128xf32>
    %127 = arith.addf %124, %126 : vector<1x128xf32>
    %128 = vector.broadcast %26 : f32 to vector<1x128xf32>
    %129 = arith.mulf %128, %86 : vector<1x128xf32>
    %130 = arith.addf %127, %129 : vector<1x128xf32>
    %131 = vector.broadcast %27 : f32 to vector<1x128xf32>
    %132 = arith.mulf %131, %98 : vector<1x128xf32>
    %133 = arith.addf %130, %132 : vector<1x128xf32>
    %134 = vector.broadcast %28 : f32 to vector<1x128xf32>
    %135 = arith.mulf %134, %110 : vector<1x128xf32>
    %136 = arith.addf %133, %135 : vector<1x128xf32>
    %137 = vector.broadcast %29 : f32 to vector<1x128xf32>
    %138 = arith.mulf %137, %122 : vector<1x128xf32>
    %139 = arith.addf %136, %138 : vector<1x128xf32>
    %140 = vector.broadcast %42 : f32 to vector<1x128xf32>
    %141 = arith.addf %139, %140 : vector<1x128xf32>
    %c0_89 = arith.constant 0 : index
    %c0_90 = arith.constant 0 : index
    %c0_91 = arith.constant 0 : index
    %142 = vector.load %arg6[%c0_89, %c0_90, %c0_91] : memref<3x1x128xf32, #tpu.memory_space<vmem>>, vector<1x1x128xf32>
    %143 = vector.shape_cast %142 : vector<1x1x128xf32> to vector<1x128xf32>
    %144 = vector.shape_cast %141 : vector<1x128xf32> to vector<1x1x128xf32>
    tpu.vector_store %arg6[%c0_89, %c0_90, %c0_91], %144 {strides = array<i32>} : memref<3x1x128xf32, #tpu.memory_space<vmem>>, vector<1x1x128xf32>,
    %145 = vector.broadcast %30 : f32 to vector<1x128xf32>
    %146 = arith.mulf %145, %62 : vector<1x128xf32>
    %147 = vector.broadcast %31 : f32 to vector<1x128xf32>
    %148 = arith.mulf %147, %74 : vector<1x128xf32>
    %149 = arith.addf %146, %148 : vector<1x128xf32>
    %150 = vector.broadcast %32 : f32 to vector<1x128xf32>
    %151 = arith.mulf %150, %86 : vector<1x128xf32>
    %152 = arith.addf %149, %151 : vector<1x128xf32>
    %153 = vector.broadcast %33 : f32 to vector<1x128xf32>
    %154 = arith.mulf %153, %98 : vector<1x128xf32>
    %155 = arith.addf %152, %154 : vector<1x128xf32>
    %156 = vector.broadcast %34 : f32 to vector<1x128xf32>
    %157 = arith.mulf %156, %110 : vector<1x128xf32>
    %158 = arith.addf %155, %157 : vector<1x128xf32>
    %159 = vector.broadcast %35 : f32 to vector<1x128xf32>
    %160 = arith.mulf %159, %122 : vector<1x128xf32>
    %161 = arith.addf %158, %160 : vector<1x128xf32>
    %162 = vector.broadcast %43 : f32 to vector<1x128xf32>
    %163 = arith.addf %161, %162 : vector<1x128xf32>
    %c1_92 = arith.constant 1 : index
    %c0_93 = arith.constant 0 : index
    %c0_94 = arith.constant 0 : index
    %164 = vector.load %arg6[%c1_92, %c0_93, %c0_94] : memref<3x1x128xf32, #tpu.memory_space<vmem>>, vector<1x1x128xf32>
    %165 = vector.shape_cast %164 : vector<1x1x128xf32> to vector<1x128xf32>
    %166 = vector.shape_cast %163 : vector<1x128xf32> to vector<1x1x128xf32>
    tpu.vector_store %arg6[%c1_92, %c0_93, %c0_94], %166 {strides = array<i32>} : memref<3x1x128xf32, #tpu.memory_space<vmem>>, vector<1x1x128xf32>,
    %167 = vector.broadcast %36 : f32 to vector<1x128xf32>
    %168 = arith.mulf %167, %62 : vector<1x128xf32>
    %169 = vector.broadcast %37 : f32 to vector<1x128xf32>
    %170 = arith.mulf %169, %74 : vector<1x128xf32>
    %171 = arith.addf %168, %170 : vector<1x128xf32>
    %172 = vector.broadcast %38 : f32 to vector<1x128xf32>
    %173 = arith.mulf %172, %86 : vector<1x128xf32>
    %174 = arith.addf %171, %173 : vector<1x128xf32>
    %175 = vector.broadcast %39 : f32 to vector<1x128xf32>
    %176 = arith.mulf %175, %98 : vector<1x128xf32>
    %177 = arith.addf %174, %176 : vector<1x128xf32>
    %178 = vector.broadcast %40 : f32 to vector<1x128xf32>
    %179 = arith.mulf %178, %110 : vector<1x128xf32>
    %180 = arith.addf %177, %179 : vector<1x128xf32>
    %181 = vector.broadcast %41 : f32 to vector<1x128xf32>
    %182 = arith.mulf %181, %122 : vector<1x128xf32>
    %183 = arith.addf %180, %182 : vector<1x128xf32>
    %184 = vector.broadcast %44 : f32 to vector<1x128xf32>
    %185 = arith.addf %183, %184 : vector<1x128xf32>
    %c2_95 = arith.constant 2 : index
    %c0_96 = arith.constant 0 : index
    %c0_97 = arith.constant 0 : index
    %186 = vector.load %arg6[%c2_95, %c0_96, %c0_97] : memref<3x1x128xf32, #tpu.memory_space<vmem>>, vector<1x1x128xf32>
    %187 = vector.shape_cast %186 : vector<1x1x128xf32> to vector<1x128xf32>
    %188 = vector.shape_cast %185 : vector<1x128xf32> to vector<1x1x128xf32>
    tpu.vector_store %arg6[%c2_95, %c0_96, %c0_97], %188 {strides = array<i32>} : memref<3x1x128xf32, #tpu.memory_space<vmem>>, vector<1x1x128xf32>,
    return
  }
  func.func @transform_0(%arg0: i32) -> (i32, i32, i32) {
    %c0_i32 = arith.constant 0 : i32
    %c0_i32_0 = arith.constant 0 : i32
    %c0_i32_1 = arith.constant 0 : i32
    return %c0_i32, %arg0, %c0_i32_0 : i32, i32, i32
  }
  func.func @transform_1(%arg0: i32) -> (i32, i32) {
    %c0_i32 = arith.constant 0 : i32
    %c0_i32_0 = arith.constant 0 : i32
    %c0_i32_1 = arith.constant 0 : i32
    return %c0_i32, %c0_i32_0 : i32, i32
  }
  func.func @transform_2(%arg0: i32) -> i32 {
    %c0_i32 = arith.constant 0 : i32
    %c0_i32_0 = arith.constant 0 : i32
    return %c0_i32 : i32
  }
  func.func @transform_3(%arg0: i32) -> (i32, i32) {
    %c0_i32 = arith.constant 0 : i32
    %c0_i32_0 = arith.constant 0 : i32
    %c0_i32_1 = arith.constant 0 : i32
    return %c0_i32, %c0_i32_0 : i32, i32
  }
  func.func @transform_4(%arg0: i32) -> i32 {
    %c0_i32 = arith.constant 0 : i32
    %c0_i32_0 = arith.constant 0 : i32
    return %c0_i32 : i32
  }
  func.func @transform_5(%arg0: i32) -> (i32, i32, i32) {
    %c0_i32 = arith.constant 0 : i32
    %c0_i32_0 = arith.constant 0 : i32
    %c0_i32_1 = arith.constant 0 : i32
    return %c0_i32, %arg0, %c0_i32_0 : i32, i32, i32
  }
}

</mosaic_0001>

<bundles_post_ra>
// kernel: tpu_custom_call.1
= control target key start
LH: loop header
LB: loop body
LE: loop exit
PB: predicated region body
PF: predicated region fallthrough
CT: control target
= control target key end

     0   :  { %10 = vsyncpa [#allocation4], 0  ;;  %s617_s0 = inlined_call_operand.vmem [shape: f32[3,1,128], index: 0, kind: input, shape index: {}]   ;;  %s618_s1 = inlined_call_operand.vmem [shape: f32[6,3], index: 1, kind: input, shape index: {}]   ;;  %s619_s2 = inlined_call_operand.vmem [shape: f32[6], index: 2, kind: input, shape index: {}]   ;;  %s620_s3 = inlined_call_operand.vmem [shape: f32[3,6], index: 3, kind: input, shape index: {}]   ;;  %s621_s4 = inlined_call_operand.vmem [shape: f32[3], index: 4, kind: input, shape index: {}]   ;;  %s622_s5 = inlined_call_operand.hbm [shape: f32[3,1,128], index: 5, kind: output, shape index: {}]  }
   0x1   :  { %11 = vsyncpa [#allocation6], 0 }
   0x2   :  { %12 = vsyncpa [#allocation9], 0  ;;  %s32_s20 = sshll.u32 %s619_s2, 4  ;;  %s33_s20 = int_to_ptr.vmem [resolvable:$true] %s32_s20 }
   0x3   :  { %13 = vsyncpa [#allocation3], 0  ;;  %s22_s23 = sshll.u32 %s618_s1, 4  ;;  %s316_s24 = scalar_lea.vmem %s33_s20, 16  ;;  %s23_s23 = int_to_ptr.vmem [resolvable:$true] %s22_s23 }
   0x4   :  { %p317_p0 = scmp.ne.s32.totalorder %s33_s20, %s316_s24  ;;  %p321_p1 = scmp.lt.s32.totalorder %s33_s20, %s33_s20 }
   0x5   :  { %p322_p2 = scmp.lt.s32.totalorder %s316_s24, %s316_s24 }
   0x7   :  { %p323_p3 = por %p322_p2, %p321_p1 }
   0x9   :  { %p324_p4 = pnand %p323_p3, %p317_p0 }
   0xb   :  { %327 = shalt.err (!%p324_p4)
}
   0xc   :  { %s394_s25 = smov [#allocation5]   ;;  %s328_s26 = scalar_lea.vmem %s23_s23, 128 }
   0xd   :  { %35 = dma.vmem_to_smem %s33_s20, 16, %s394_s25, [#allocation6]  }
   0xe   :  { %p329_p5 = scmp.ne.s32.totalorder %s23_s23, %s328_s26  ;;  %p333_p6 = scmp.lt.s32.totalorder %s23_s23, %s23_s23 }
   0xf   :  { %p334_p7 = scmp.lt.s32.totalorder %s328_s26, %s328_s26 }
  0x11   :  { %p335_p8 = por %p334_p7, %p333_p6 }
  0x13   :  { %p336_p9 = pnand %p335_p8, %p329_p5 }
  0x15   :  { %339 = shalt.err (!%p336_p9)
}
  0x16   :  { %s395_s2 = smov [#allocation2]   ;;  %s42_s28 = sshll.u32 %s620_s3, 4  ;;  %s43_s28 = int_to_ptr.vmem [resolvable:$true] %s42_s28 }
  0x17   :  { %25 = dma.vmem_to_smem %s23_s23, 128, %s395_s2, [#allocation4]  }
  0x18   :  { %s52_s6 = sshll.u32 %s621_s4, 4  ;;  %s340_s7 = scalar_lea.vmem %s43_s28, 64  ;;  %s53_s6 = int_to_ptr.vmem [resolvable:$true] %s52_s6 }
  0x19   :  { %p341_p10 = scmp.ne.s32.totalorder %s43_s28, %s340_s7  ;;  %p345_p11 = scmp.lt.s32.totalorder %s43_s28, %s43_s28 }
  0x1a   :  { %p346_p12 = scmp.lt.s32.totalorder %s340_s7, %s340_s7 }
  0x1c   :  { %p347_p13 = por %p346_p12, %p345_p11 }
  0x1e   :  { %p348_p0 = pnand %p347_p13, %p341_p10 }
  0x20   :  { %351 = shalt.err (!%p348_p0)
}
  0x21   :  { %s396_s8 = smov [#allocation7]   ;;  %s352_s9 = scalar_lea.vmem %s53_s6, 16 }
  0x22   :  { %45 = dma.vmem_to_smem %s43_s28, 64, %s396_s8, [#allocation6]  }
  0x23   :  { %p353_p1 = scmp.ne.s32.totalorder %s53_s6, %s352_s9  ;;  %p357_p2 = scmp.lt.s32.totalorder %s53_s6, %s53_s6 }
  0x24   :  { %p358_p3 = scmp.lt.s32.totalorder %s352_s9, %s352_s9 }
  0x26   :  { %p359_p4 = por %p358_p3, %p357_p2 }
  0x28   :  { %p360_p5 = pnand %p359_p4, %p353_p1 }
  0x2a   :  { %363 = shalt.err (!%p360_p5)
}
  0x2b   :  { %s397_s3 = smov [#allocation8]  }
  0x2c   :  { %55 = dma.vmem_to_smem %s53_s6, 16, %s397_s3, [#allocation9]  }
  0x2d   :  { %386 = dma.done.wait [#allocation4], 128  }
  0x2e   :  { %387 = vsyncadd [#allocation4], 4294967168 }
  0x2f   :  { %388 = dma.done.wait [#allocation6], 80  }
  0x30   :  { %389 = vsyncadd [#allocation6], 4294967216 }
  0x31   :  { %390 = dma.done.wait [#allocation9], 16  }
  0x32   :  { %391 = vsyncadd [#allocation9], 4294967280 }
  0x33   :  { %68 = sfence }
  0x34   :  { %s69_s4 = sld [smem:[#allocation2]]  ;;  %s266_s10 = sld [smem:[#allocation2 + $0x1]]  ;;  %v450_v0 = vld [vmem:[%s617_s0] sm:$0x1]  ;;  %v459_v1 = vld [vmem:[%s617_s0 + $0x1] sm:$0x1] }
  0x35   :  { %s267_s11 = sld [smem:[#allocation2 + $0x2]]  ;;  %s268_s12 = sld [smem:[#allocation2 + $0x80]]  ;;  %v468_v2 = vld [vmem:[%s617_s0 + $0x2] sm:$0x1] }
  0x36   :  { %s269_s13 = sld [smem:[#allocation2 + $0x81]]  ;;  %s270_s14 = sld [smem:[#allocation2 + $0x82]] }
  0x37   :  { %s443_s15 = sld [smem:[#allocation2 + $0x100]]  ;;  %s445_s16 = sld [smem:[#allocation2 + $0x101]] }
  0x38   :  { %s452_s19 = sld [smem:[#allocation2 + $0x102]]  ;;  %s454_s20 = sld [smem:[#allocation2 + $0x180]] }
  0x39   :  { %s461_s23 = sld [smem:[#allocation2 + $0x181]]  ;;  %s463_s24 = sld [smem:[#allocation2 + $0x182]] }
  0x3a   :  { %s470_s2 = sld [smem:[#allocation2 + $0x200]]  ;;  %s472_s1 = sld [smem:[#allocation2 + $0x201]]  ;;  %v119_v3 = vstv %s69_s4  ;;  %v121_v4 = vstv %s266_s10 }
  0x3b   :  { %s474_s27 = sld [smem:[#allocation2 + $0x202]]  ;;  %s476_s28 = sld [smem:[#allocation2 + $0x280]]  ;;  %v120_v5 = vmul.f32 %v119_v3, %v450_v0  ;;  %v122_v6 = vmul.f32 %v459_v1, %v121_v4  ;;  %v124_v7 = vstv %s267_s11  ;;  %v130_v8 = vstv %s268_s12 }
  0x3c   :  { %v125_v9 = vmul.f32 %v468_v2, %v124_v7  ;;  %v131_v10 = vmul.f32 %v130_v8, %v450_v0  ;;  %v132_v11 = vstv %s269_s13  ;;  %v135_v12 = vstv %s270_s14  ;;  %s482_s0 = sld [smem:[#allocation5]]  ;;  %s484_s29 = sld [smem:[#allocation5 + $0x1]] }
  0x3d   :  { %v123_v13 = vadd.f32 %v122_v6, %v120_v5  ;;  %v133_v14 = vmul.f32 %v459_v1, %v132_v11  ;;  %v136_v15 = vmul.f32 %v468_v2, %v135_v12  ;;  %v141_v16 = vstv %s443_s15  ;;  %s489_s30 = sld [smem:[#allocation5 + $0x2]]  ;;  %s491_s6 = sld [smem:[#allocation5 + $0x3]] }
  0x3e   :  { %v142_v17 = vmul.f32 %v141_v16, %v450_v0  ;;  %v143_v18 = vstv %s445_s16  ;;  %v146_v19 = vstv %s452_s19  ;;  %v152_v20 = vstv %s454_s20  ;;  %s497_s7 = sld [smem:[#allocation2 + $0x281]]  ;;  %s499_s8 = sld [smem:[#allocation2 + $0x282]] }
  0x3f   :  { %v126_v21 = vadd.f32 %v125_v9, %v123_v13  ;;  %v134_v22 = vadd.f32 %v133_v14, %v131_v10  ;;  %v144_v23 = vmul.f32 %v459_v1, %v143_v18  ;;  %v147_v24 = vmul.f32 %v468_v2, %v146_v19  ;;  %s503_s9 = sld [smem:[#allocation5 + $0x4]]  ;;  %s505_s3 = sld [smem:[#allocation7]] }
  0x40   :  { %v153_v25 = vmul.f32 %v152_v20, %v450_v0  ;;  %v154_v26 = vstv %s461_s23  ;;  %v157_v27 = vstv %s463_s24  ;;  %v163_v28 = vstv %s470_s2  ;;  %s511_s4 = sld [smem:[#allocation7 + $0x1]]  ;;  %s515_s10 = sld [smem:[#allocation7 + $0x2]] }
  0x41   :  { %v137_v29 = vadd.f32 %v136_v15, %v134_v22  ;;  %v145_v30 = vadd.f32 %v144_v23, %v142_v17  ;;  %v155_v31 = vmul.f32 %v459_v1, %v154_v26  ;;  %v158_v32 = vmul.f32 %v468_v2, %v157_v27  ;;  %s517_s11 = sld [smem:[#allocation7 + $0x3]]  ;;  %s523_s12 = sld [smem:[#allocation5 + $0x5]] }
  0x42   :  { %v164_v33 = vmul.f32 %v163_v28, %v450_v0  ;;  %v165_v34 = vstv %s472_s1  ;;  %v168_v35 = vstv %s474_s27  ;;  %v174_v36 = vstv %s476_s28  ;;  %s527_s13 = sld [smem:[#allocation7 + $0x4]]  ;;  %s529_s14 = sld [smem:[#allocation7 + $0x5]] }
  0x43   :  { %v127_v37 = vstv %s482_s0  ;;  %v138_v38 = vstv %s484_s29  ;;  %v148_v39 = vadd.f32 %v147_v24, %v145_v30  ;;  %v156_v40 = vadd.f32 %v155_v31, %v153_v25  ;;  %s535_s15 = sld [smem:[#allocation7 + $0x80]]  ;;  %s537_s16 = sld [smem:[#allocation7 + $0x81]] }
  0x44   :  { %v128_v41 = vadd.f32 %v127_v37, %v126_v21  ;;  %v139_v42 = vadd.f32 %v138_v38, %v137_v29  ;;  %v149_v43 = vstv %s489_s30  ;;  %v160_v44 = vstv %s491_s6  ;;  %s544_s17 = sld [smem:[#allocation7 + $0x82]]  ;;  %s549_s18 = sld [smem:[#allocation7 + $0x83]] }
  0x45   :  { %v150_v45 = vadd.f32 %v149_v43, %v148_v39  ;;  %v159_v46 = vadd.f32 %v158_v32, %v156_v40  ;;  %v166_v47 = vmul.f32 %v459_v1, %v165_v34  ;;  %v169_v48 = vmul.f32 %v468_v2, %v168_v35  ;;  %s555_s19 = sld [smem:[#allocation7 + $0x84]]  ;;  %s557_s20 = sld [smem:[#allocation8]] }
  0x46   :  { %v539_v49 = vmax.f32 %v128_v41, 0.0  ;;  %v541_v50 = vmax.f32 %v139_v42, 0.0  ;;  %v175_v51 = vmul.f32 %v174_v36, %v450_v0  ;;  %v176_v55 = vstv %s497_s7  ;;  %s561_s21 = sld [smem:[#allocation7 + $0x85]]  ;;  %s566_s22 = sld [smem:[#allocation7 + $0x100]] }
  0x47   :  { %v546_v52 = vmax.f32 %v150_v45, 0.0  ;;  %v161_v53 = vadd.f32 %v160_v44, %v159_v46  ;;  %v167_v54 = vadd.f32 %v166_v47, %v164_v33  ;;  %v171_v56 = vstv %s503_s9  ;;  %s571_s23 = sld [smem:[#allocation7 + $0x101]]  ;;  %s573_s24 = sld [smem:[#allocation7 + $0x102]] }
  0x48   :  { %v177_v57 = vmul.f32 %v459_v1, %v176_v55  ;;  %v179_v58 = vstv %s499_s8  ;;  %v185_v59 = vstv %s505_s3  ;;  %v187_v3 = vstv %s511_s4  ;;  %s577_s25 = sld [smem:[#allocation7 + $0x103]]  ;;  %s581_s26 = sld [smem:[#allocation7 + $0x104]] }
  0x49   :  { %v162_v60 = vmax.f32 %v161_v53, 0.0  ;;  %v170_v61 = vadd.f32 %v169_v48, %v167_v54  ;;  %v180_v62 = vmul.f32 %v468_v2, %v179_v58  ;;  %v186_v63 = vmul.f32 %v185_v59, %v539_v49  ;;  %s586_s2 = sld [smem:[#allocation8 + $0x1]]  ;;  %s590_s1 = sld [smem:[#allocation7 + $0x105]] }
  0x4a   :  { %v178_v0 = vadd.f32 %v177_v57, %v175_v51  ;;  %v190_v1 = vstv %s515_s10  ;;  %v193_v4 = vstv %s517_s11  ;;  %v182_v6 = vstv %s523_s12  ;;  %s306_s27 = sld [smem:[#allocation8 + $0x2]]  ;;  %s398_s28 = smov [#allocation10]  }
  0x4b   :  { %v172_v5 = vadd.f32 %v171_v56, %v170_v61  ;;  %v188_v7 = vmul.f32 %v187_v3, %v541_v50  ;;  %v191_v2 = vmul.f32 %v190_v1, %v546_v52  ;;  %v194_v9 = vmul.f32 %v193_v4, %v162_v60  ;;  %s252_s0 = sshll.u32 %s398_s28, 4  ;;  %s253_s0 = int_to_ptr.vmem [resolvable:$true] %s252_s0 }
  0x4c   :  { %v181_v8 = vadd.f32 %v180_v62, %v178_v0  ;;  %v196_v10 = vstv %s527_s13  ;;  %v199_v11 = vstv %s529_s14  ;;  %v205_v14 = vstv %s535_s15  ;;  %s364_s29 = scalar_lea.vmem %s253_s0, 48  ;;  %s368_s30 = scalar_lea.vmem %s253_s0, 64 }
  0x4d   :  { %v173_v12 = vmax.f32 %v172_v5, 0.0  ;;  %v189_v13 = vadd.f32 %v188_v7, %v186_v63  ;;  %v207_v15 = vstv %s537_s16  ;;  %v206_v17 = vmul.f32 %v205_v14, %v539_v49  ;;  %p365_p6 = scmp.ne.s32.totalorder %s253_s0, %s364_s29  ;;  %p369_p7 = scmp.lt.s32.totalorder %s253_s0, %s253_s0 }
  0x4e   :  { %v183_v16 = vadd.f32 %v182_v6, %v181_v8  ;;  %v208_v18 = vmul.f32 %v207_v15, %v541_v50  ;;  %v210_v19 = vstv %s544_s17  ;;  %v213_v23 = vstv %s549_s18  ;;  %p370_p8 = scmp.lt.s32.totalorder %s368_s30, %s364_s29 }
  0x4f   :  { %v192_v20 = vadd.f32 %v191_v2, %v189_v13  ;;  %v197_v21 = vmul.f32 %v196_v10, %v173_v12  ;;  %v211_v22 = vmul.f32 %v210_v19, %v546_v52  ;;  %v214_v26 = vmul.f32 %v213_v23, %v162_v60 }
  0x50   :  { %v184_v24 = vmax.f32 %v183_v16, 0.0  ;;  %v209_v25 = vadd.f32 %v208_v18, %v206_v17  ;;  %v216_v27 = vstv %s555_s19  ;;  %v202_v29 = vstv %s557_s20  ;;  %p371_p9 = por %p370_p8, %p369_p7 }
  0x51   :  { %v195_v28 = vadd.f32 %v194_v9, %v192_v20  ;;  %v217_v30 = vmul.f32 %v216_v27, %v173_v12  ;;  %v219_v31 = vstv %s561_s21  ;;  %v226_v35 = vstv %s566_s22 }
  0x52   :  { %v200_v32 = vmul.f32 %v199_v11, %v184_v24  ;;  %v212_v33 = vadd.f32 %v211_v22, %v209_v25  ;;  %v220_v34 = vmul.f32 %v219_v31, %v184_v24  ;;  %v227_v37 = vmul.f32 %v226_v35, %v539_v49  ;;  %p372_p10 = pnand %p371_p9, %p365_p6 }
  0x53   :  { %v198_v36 = vadd.f32 %v197_v21, %v195_v28  ;;  %v228_v38 = vstv %s571_s23  ;;  %v231_v39 = vstv %s573_s24  ;;  %v234_v43 = vstv %s577_s25 }
  0x54   :  { %v215_v40 = vadd.f32 %v214_v26, %v212_v33  ;;  %v229_v41 = vmul.f32 %v228_v38, %v541_v50  ;;  %v232_v42 = vmul.f32 %v231_v39, %v546_v52  ;;  %v237_v45 = vstv %s581_s26 }
  0x55   :  { %v201_v44 = vadd.f32 %v200_v32, %v198_v36  ;;  %v235_v48 = vmul.f32 %v234_v43, %v162_v60  ;;  %v222_v53 = vstv %s586_s2  ;;  %v240_v54 = vstv %s590_s1 }
  0x56   :  { %v218_v46 = vadd.f32 %v217_v30, %v215_v40  ;;  %v230_v47 = vadd.f32 %v229_v41, %v227_v37  ;;  %v238_v49 = vmul.f32 %v237_v45, %v173_v12  ;;  %v241_v59 = vmul.f32 %v240_v54, %v184_v24 }
  0x57   :  { %v203_v51 = vadd.f32 %v202_v29, %v201_v44  ;;  %v243_v52 = vstv %s306_s27 }
  0x58   :  { %v221_v55 = vadd.f32 %v220_v34, %v218_v46  ;;  %v233_v56 = vadd.f32 %v232_v42, %v230_v47 }
  0x59   :  { %204 = vst [vmem:[#allocation10] sm:$0x1] %v203_v51 }
  0x5a   :  { %v223_v57 = vadd.f32 %v222_v53, %v221_v55  ;;  %v236_v58 = vadd.f32 %v235_v48, %v233_v56 }
  0x5c   :  { %225 = vst [vmem:[#allocation10 + $0x1] sm:$0x1] %v223_v57  ;;  %v239_v50 = vadd.f32 %v238_v49, %v236_v58 }
  0x5e   :  { %v242_v61 = vadd.f32 %v241_v59, %v239_v50 }
  0x60   :  { %v244_v62 = vadd.f32 %v243_v52, %v242_v61 }
  0x62   :  { %246 = vst [vmem:[#allocation10 + $0x2] sm:$0x1] %v244_v62 }
  0x63   :  { %375 = shalt.err (!%p372_p10)
}
  0x64   :  { %s376_s8 = scalar_lea.hbm %s622_s5, 48 }
  0x65   :  { %p377_p11 = scmp.ne.s32.totalorder %s622_s5, %s376_s8  ;;  %p380_p12 = scmp.lt.u32.totalorder %s376_s8, %s622_s5 }
  0x67   :  { %p382_p13 = pnand %p380_p12, %p377_p11 }
  0x69   :  { %385 = shalt.err (!%p382_p13)
}
  0x6a   :  { %s399_s11 = smov 16   ;;  %s400_s12 = smov 1  }
  0x6b   :  { %258 = dma.vmem_to_hbm [thread:$0]  %s253_s0, 48, %s622_s5, [#allocation3], %s399_s11, %s399_s11, %s400_s12  }
  0x6c   :  { %392 = dma.done.wait [#allocation3], 48  }
  0x6d   :  { %393 = vsyncadd [#allocation3], 4294967248 }
  0x6e   :  { %262 = vsyncpa [#allocation3], 1 }
  0x6f   :  { %263 = vsyncpa [#allocation4], 1 }
  0x70   :  { %264 = vsyncpa [#allocation6], 1 }
  0x71   :  { %265 = vsyncpa [#allocation9], 1 }

</bundles_post_ra>
